<compile_context>
chip_gen: v7x
topology: tpu7x:2x2x1
jax: 0.10.0
libtpu: 0.0.40
codegen_flags: <defaults>
</compile_context>

<pallas_src>
import jax
import jax.numpy as jnp
from jax.experimental import pallas as pl
from jax.experimental.pallas import tpu as pltpu

E = 64                       # number of edges (rows)
F_SRC, F_DST, F_EDGE = 8, 8, 16
IN_DIM = F_SRC + F_DST + F_EDGE          # 32
DIMS = [32, 32]
OUT_DIM = 16
LN_EPS = 1e-5


def edge_model_kernel(src_ref, dst_ref, edg_ref, wA_ref, w2_ref, vec_ref, out_ref):
    # wA_ref : [3, 32, 32] = [w0 + I, w1a, w1b]   (Block-0 residual pre-folded)
    # w2_ref : [32, 16]
    # vec_ref: [6, 32]     = [b0, b1a, b1b, gamma, beta, b2 (zero-padded to 32)]
    vec = vec_ref[...]
    b0    = vec[0:1, :]
    b1a   = vec[1:2, :]
    b1b   = vec[2:3, :]
    gamma = vec[3:4, :]
    beta  = vec[4:5, :]
    b2    = vec[5:6, :OUT_DIM]

    w0  = wA_ref[0]          # [32, 32], residual identity already folded in
    w1a = wA_ref[1]
    w1b = wA_ref[2]

    # ---- Block 0: x @ (W0 + I) + b0, as three partial matmuls (concat fused away) ----
    h = (jnp.dot(src_ref[...], w0[:F_SRC, :],
                 preferred_element_type=jnp.float32)
         + jnp.dot(dst_ref[...], w0[F_SRC:F_SRC + F_DST, :],
                   preferred_element_type=jnp.float32)
         + jnp.dot(edg_ref[...], w0[F_SRC + F_DST:, :],
                   preferred_element_type=jnp.float32)
         + b0)
    x1 = jnp.maximum(h, 0.0)                         # ReLU (residual already in)

    # ---- Block 1: Linear-ReLU-Linear; LayerNorm; residual; ReLU ----
    t = jnp.maximum(jnp.dot(x1, w1a, preferred_element_type=jnp.float32) + b1a, 0.0)
    u = jnp.dot(t, w1b, preferred_element_type=jnp.float32) + b1b
    mu = jnp.mean(u, axis=-1, keepdims=True)
    var = jnp.mean((u - mu) * (u - mu), axis=-1, keepdims=True)   # biased var (PyTorch LN)
    ln = (u - mu) * jax.lax.rsqrt(var + LN_EPS) * gamma + beta
    x2 = jnp.maximum(ln + x1, 0.0)                   # residual (dims[0] == dims[1]) + ReLU

    # ---- Block 2: Linear(dims[-1], out_dim); no norm; no residual; Identity ----
    out_ref[...] = (jnp.dot(x2, w2_ref[...], preferred_element_type=jnp.float32) + b2)


def edge_model_forward(src, dest, edge_attr, params, *, tm=None):
    (w0, b0, w1a, b1a, w1b, b1b, gamma, beta, w2, b2) = params
    n_rows = src.shape[0]
    assert src.shape[1] == F_SRC and dest.shape[1] == F_DST and edge_attr.shape[1] == F_EDGE

    # Row tile: single grid step for small problems; 512 rows per step otherwise.
    if tm is None:
        tm = n_rows if n_rows <= 512 else 512
    tm = max(8, ((tm + 7) // 8) * 8)

    # Pad ragged row counts with zeros (sliced off after the call).
    n_pad = (-n_rows) % tm
    if n_pad:
        src = jnp.pad(src, ((0, n_pad), (0, 0)))
        dest = jnp.pad(dest, ((0, n_pad), (0, 0)))
        edge_attr = jnp.pad(edge_attr, ((0, n_pad), (0, 0)))
    n_total = n_rows + n_pad

    # Pack parameters (could be done once at init time; cheap either way).
    w0_folded = w0 + jnp.eye(IN_DIM, DIMS[0], dtype=w0.dtype)   # fold Block-0 residual
    wA = jnp.stack([w0_folded, w1a, w1b], axis=0)               # [3, 32, 32]
    b2_pad = jnp.pad(b2, ((0, 0), (0, DIMS[1] - OUT_DIM)))
    vecs = jnp.concatenate([b0, b1a, b1b, gamma, beta, b2_pad], axis=0)   # [6, 32]

    grid = (n_total // tm,)

    out = pl.pallas_call(
        edge_model_kernel,
        out_shape=jax.ShapeDtypeStruct((n_total, OUT_DIM), jnp.float32),
        grid_spec=pltpu.PrefetchScalarGridSpec(
            num_scalar_prefetch=0,
            grid=grid,
            in_specs=[
                pl.BlockSpec((tm, F_SRC), lambda i: (i, 0)),
                pl.BlockSpec((tm, F_DST), lambda i: (i, 0)),
                pl.BlockSpec((tm, F_EDGE), lambda i: (i, 0)),
                pl.BlockSpec((3, IN_DIM, DIMS[0]), lambda i: (0, 0, 0)),
                pl.BlockSpec((DIMS[1], OUT_DIM), lambda i: (0, 0)),
                pl.BlockSpec((6, DIMS[1]), lambda i: (0, 0)),
            ],
            out_specs=pl.BlockSpec((tm, OUT_DIM), lambda i: (i, 0)),
        ),
        compiler_params=pltpu.CompilerParams(
            dimension_semantics=("parallel",)),
    )(src, dest, edge_attr, wA, w2, vecs)

    return out[:n_rows] if n_pad else out


def reference_forward(src, dest, edge_attr, params):
    # pure-JAX reference with identical semantics (sanity check)
    (w0, b0, w1a, b1a, w1b, b1b, gamma, beta, w2, b2) = params
    x = jnp.concatenate([src, dest, edge_attr], axis=1)
    h = x @ w0 + b0
    h = h + x
    x1 = jnp.maximum(h, 0.0)
    t = jnp.maximum(x1 @ w1a + b1a, 0.0)
    u = t @ w1b + b1b
    mu = jnp.mean(u, axis=-1, keepdims=True)
    var = jnp.mean((u - mu) ** 2, axis=-1, keepdims=True)
    ln = (u - mu) / jnp.sqrt(var + LN_EPS) * gamma + beta
    x2 = jnp.maximum(ln + x1, 0.0)
    return x2 @ w2 + b2


def init_params(key):
    ks = jax.random.split(key, 8)
    scale = 0.1
    w0 = scale * jax.random.normal(ks[0], (IN_DIM, DIMS[0]), jnp.float32)
    b0 = scale * jax.random.normal(ks[1], (1, DIMS[0]), jnp.float32)
    w1a = scale * jax.random.normal(ks[2], (DIMS[0], DIMS[1]), jnp.float32)
    b1a = scale * jax.random.normal(ks[3], (1, DIMS[1]), jnp.float32)
    w1b = scale * jax.random.normal(ks[4], (DIMS[1], DIMS[1]), jnp.float32)
    b1b = scale * jax.random.normal(ks[5], (1, DIMS[1]), jnp.float32)
    gamma = jnp.ones((1, DIMS[1]), jnp.float32)      # LayerNorm default init
    beta = jnp.zeros((1, DIMS[1]), jnp.float32)
    w2 = scale * jax.random.normal(ks[6], (DIMS[1], OUT_DIM), jnp.float32)
    b2 = scale * jax.random.normal(ks[7], (1, OUT_DIM), jnp.float32)
    return (w0, b0, w1a, b1a, w1b, b1b, gamma, beta, w2, b2)


if __name__ == "__main__":
    key = jax.random.PRNGKey(0)
    k_src, k_dst, k_edge, k_p = jax.random.split(key, 4)
    src = jax.random.normal(k_src, (E, F_SRC), jnp.float32)
    dest = jax.random.normal(k_dst, (E, F_DST), jnp.float32)
    edge_attr = jax.random.normal(k_edge, (E, F_EDGE), jnp.float32)
    params = init_params(k_p)

    out = edge_model_forward(src, dest, edge_attr, params)
    out = jax.block_until_ready(out)

    ref = reference_forward(src, dest, edge_attr, params)
    assert out.shape == (E, OUT_DIM)
    assert jnp.allclose(out, ref, atol=1e-5, rtol=1e-5)
    print("KERNEL_OK")
</pallas_src>

<mosaic_0001>
module attributes {stable_mosaic.version = 11 : i64} {
  func.func @edge_model_kernel(%arg0: i32, %arg1: memref<64x8xf32, #tpu.memory_space<vmem>>, %arg2: memref<64x8xf32, #tpu.memory_space<vmem>>, %arg3: memref<64x16xf32, #tpu.memory_space<vmem>>, %arg4: memref<3x32x32xf32, #tpu.memory_space<vmem>>, %arg5: memref<32x16xf32, #tpu.memory_space<vmem>>, %arg6: memref<6x32xf32, #tpu.memory_space<vmem>>, %arg7: memref<64x16xf32, #tpu.memory_space<vmem>>) attributes {dimension_semantics = [#tpu.dimension_semantics<parallel>], iteration_bounds = array<i64: 1>, scalar_prefetch = 0 : i64, scratch_operands = 0 : i64, tpu.core_type = #tpu.core_type<tc>, window_params = [{transform_indices = @transform_0, window_bounds = array<i64: 64, 8>}, {transform_indices = @transform_1, window_bounds = array<i64: 64, 8>}, {transform_indices = @transform_2, window_bounds = array<i64: 64, 16>}, {pipeline_mode = #tpu.pipeline_mode<synchronous>, transform_indices = @transform_3, window_bounds = array<i64: 3, 32, 32>}, {pipeline_mode = #tpu.pipeline_mode<synchronous>, transform_indices = @transform_4, window_bounds = array<i64: 32, 16>}, {pipeline_mode = #tpu.pipeline_mode<synchronous>, transform_indices = @transform_5, window_bounds = array<i64: 6, 32>}, {transform_indices = @transform_6, window_bounds = array<i64: 64, 16>}]} {
    %c0 = arith.constant 0 : index
    %c0_0 = arith.constant 0 : index
    %0 = vector.load %arg6[%c0, %c0_0] : memref<6x32xf32, #tpu.memory_space<vmem>>, vector<6x32xf32>
    %1 = vector.extract_strided_slice %0 {offsets = [0, 0], sizes = [1, 32], strides = [1, 1]} : vector<6x32xf32> to vector<1x32xf32>
    %2 = vector.extract_strided_slice %0 {offsets = [1, 0], sizes = [1, 32], strides = [1, 1]} : vector<6x32xf32> to vector<1x32xf32>
    %3 = vector.extract_strided_slice %0 {offsets = [2, 0], sizes = [1, 32], strides = [1, 1]} : vector<6x32xf32> to vector<1x32xf32>
    %4 = vector.extract_strided_slice %0 {offsets = [3, 0], sizes = [1, 32], strides = [1, 1]} : vector<6x32xf32> to vector<1x32xf32>
    %5 = vector.extract_strided_slice %0 {offsets = [4, 0], sizes = [1, 32], strides = [1, 1]} : vector<6x32xf32> to vector<1x32xf32>
    %6 = vector.extract_strided_slice %0 {offsets = [5, 0], sizes = [1, 16], strides = [1, 1]} : vector<6x32xf32> to vector<1x16xf32>
    %c0_1 = arith.constant 0 : index
    %c0_2 = arith.constant 0 : index
    %c0_3 = arith.constant 0 : index
    %7 = vector.load %arg4[%c0_1, %c0_2, %c0_3] : memref<3x32x32xf32, #tpu.memory_space<vmem>>, vector<1x32x32xf32>
    %8 = vector.shape_cast %7 : vector<1x32x32xf32> to vector<32x32xf32>
    %c1 = arith.constant 1 : index
    %c0_4 = arith.constant 0 : index
    %c0_5 = arith.constant 0 : index
    %9 = vector.load %arg4[%c1, %c0_4, %c0_5] : memref<3x32x32xf32, #tpu.memory_space<vmem>>, vector<1x32x32xf32>
    %10 = vector.shape_cast %9 : vector<1x32x32xf32> to vector<32x32xf32>
    %c2 = arith.constant 2 : index
    %c0_6 = arith.constant 0 : index
    %c0_7 = arith.constant 0 : index
    %11 = vector.load %arg4[%c2, %c0_6, %c0_7] : memref<3x32x32xf32, #tpu.memory_space<vmem>>, vector<1x32x32xf32>
    %12 = vector.shape_cast %11 : vector<1x32x32xf32> to vector<32x32xf32>
    %c0_8 = arith.constant 0 : index
    %c0_9 = arith.constant 0 : index
    %13 = vector.load %arg1[%c0_8, %c0_9] : memref<64x8xf32, #tpu.memory_space<vmem>>, vector<64x8xf32>
    %14 = vector.extract_strided_slice %8 {offsets = [0, 0], sizes = [8, 32], strides = [1, 1]} : vector<32x32xf32> to vector<8x32xf32>
    %cst = arith.constant dense<0.000000e+00> : vector<64x32xf32>
    %15 = tpu.matmul %13, %14, %cst {dimension_numbers = #tpu.dot_dimension_numbers<[1], [0], [0], [1], [0, 0, 1, 1], [], []>} : vector<64x8xf32>, vector<8x32xf32>, vector<64x32xf32> -> vector<64x32xf32>
    %c0_10 = arith.constant 0 : index
    %c0_11 = arith.constant 0 : index
    %16 = vector.load %arg2[%c0_10, %c0_11] : memref<64x8xf32, #tpu.memory_space<vmem>>, vector<64x8xf32>
    %17 = vector.extract_strided_slice %8 {offsets = [8, 0], sizes = [8, 32], strides = [1, 1]} : vector<32x32xf32> to vector<8x32xf32>
    %cst_12 = arith.constant dense<0.000000e+00> : vector<64x32xf32>
    %18 = tpu.matmul %16, %17, %cst_12 {dimension_numbers = #tpu.dot_dimension_numbers<[1], [0], [0], [1], [0, 0, 1, 1], [], []>} : vector<64x8xf32>, vector<8x32xf32>, vector<64x32xf32> -> vector<64x32xf32>
    %19 = arith.addf %15, %18 : vector<64x32xf32>
    %c0_13 = arith.constant 0 : index
    %c0_14 = arith.constant 0 : index
    %20 = vector.load %arg3[%c0_13, %c0_14] : memref<64x16xf32, #tpu.memory_space<vmem>>, vector<64x16xf32>
    %21 = vector.extract_strided_slice %8 {offsets = [16, 0], sizes = [16, 32], strides = [1, 1]} : vector<32x32xf32> to vector<16x32xf32>
    %cst_15 = arith.constant dense<0.000000e+00> : vector<64x32xf32>
    %22 = tpu.matmul %20, %21, %cst_15 {dimension_numbers = #tpu.dot_dimension_numbers<[1], [0], [0], [1], [0, 0, 1, 1], [], []>} : vector<64x16xf32>, vector<16x32xf32>, vector<64x32xf32> -> vector<64x32xf32>
    %23 = arith.addf %19, %22 : vector<64x32xf32>
    %24 = vector.broadcast %1 : vector<1x32xf32> to vector<64x32xf32>
    %25 = arith.addf %23, %24 : vector<64x32xf32>
    %cst_16 = arith.constant 0.000000e+00 : f32
    %26 = vector.broadcast %cst_16 : f32 to vector<64x32xf32>
    %27 = arith.maximumf %25, %26 : vector<64x32xf32>
    %cst_17 = arith.constant dense<0.000000e+00> : vector<64x32xf32>
    %28 = tpu.matmul %27, %10, %cst_17 {dimension_numbers = #tpu.dot_dimension_numbers<[1], [0], [0], [1], [0, 0, 1, 1], [], []>} : vector<64x32xf32>, vector<32x32xf32>, vector<64x32xf32> -> vector<64x32xf32>
    %29 = vector.broadcast %2 : vector<1x32xf32> to vector<64x32xf32>
    %30 = arith.addf %28, %29 : vector<64x32xf32>
    %cst_18 = arith.constant 0.000000e+00 : f32
    %31 = vector.broadcast %cst_18 : f32 to vector<64x32xf32>
    %32 = arith.maximumf %30, %31 : vector<64x32xf32>
    %cst_19 = arith.constant dense<0.000000e+00> : vector<64x32xf32>
    %33 = tpu.matmul %32, %12, %cst_19 {dimension_numbers = #tpu.dot_dimension_numbers<[1], [0], [0], [1], [0, 0, 1, 1], [], []>} : vector<64x32xf32>, vector<32x32xf32>, vector<64x32xf32> -> vector<64x32xf32>
    %34 = vector.broadcast %3 : vector<1x32xf32> to vector<64x32xf32>
    %35 = arith.addf %33, %34 : vector<64x32xf32>
    %cst_20 = arith.constant dense<0.000000e+00> : vector<64xf32>
    %36 = vector.multi_reduction <add>, %35, %cst_20 [1] : vector<64x32xf32> to vector<64xf32>
    %37 = vector.shape_cast %36 : vector<64xf32> to vector<64x1xf32>
    %cst_21 = arith.constant 3.200000e+01 : f32
    %38 = vector.broadcast %cst_21 : f32 to vector<64x1xf32>
    %39 = arith.divf %37, %38 : vector<64x1xf32>
    %40 = vector.broadcast %39 : vector<64x1xf32> to vector<64x32xf32>
    %41 = arith.subf %35, %40 : vector<64x32xf32>
    %42 = vector.broadcast %39 : vector<64x1xf32> to vector<64x32xf32>
    %43 = arith.subf %35, %42 : vector<64x32xf32>
    %44 = arith.mulf %41, %43 : vector<64x32xf32>
    %cst_22 = arith.constant dense<0.000000e+00> : vector<64xf32>
    %45 = vector.multi_reduction <add>, %44, %cst_22 [1] : vector<64x32xf32> to vector<64xf32>
    %46 = vector.shape_cast %45 : vector<64xf32> to vector<64x1xf32>
    %cst_23 = arith.constant 3.200000e+01 : f32
    %47 = vector.broadcast %cst_23 : f32 to vector<64x1xf32>
    %48 = arith.divf %46, %47 : vector<64x1xf32>
    %49 = vector.broadcast %39 : vector<64x1xf32> to vector<64x32xf32>
    %50 = arith.subf %35, %49 : vector<64x32xf32>
    %cst_24 = arith.constant 9.99999974E-6 : f32
    %51 = vector.broadcast %cst_24 : f32 to vector<64x1xf32>
    %52 = arith.addf %48, %51 : vector<64x1xf32>
    %53 = math.rsqrt %52 : vector<64x1xf32>
    %54 = vector.broadcast %53 : vector<64x1xf32> to vector<64x32xf32>
    %55 = arith.mulf %50, %54 : vector<64x32xf32>
    %56 = vector.broadcast %4 : vector<1x32xf32> to vector<64x32xf32>
    %57 = arith.mulf %55, %56 : vector<64x32xf32>
    %58 = vector.broadcast %5 : vector<1x32xf32> to vector<64x32xf32>
    %59 = arith.addf %57, %58 : vector<64x32xf32>
    %60 = arith.addf %59, %27 : vector<64x32xf32>
    %cst_25 = arith.constant 0.000000e+00 : f32
    %61 = vector.broadcast %cst_25 : f32 to vector<64x32xf32>
    %62 = arith.maximumf %60, %61 : vector<64x32xf32>
    %c0_26 = arith.constant 0 : index
    %c0_27 = arith.constant 0 : index
    %63 = vector.load %arg5[%c0_26, %c0_27] : memref<32x16xf32, #tpu.memory_space<vmem>>, vector<32x16xf32>
    %cst_28 = arith.constant dense<0.000000e+00> : vector<64x16xf32>
    %64 = tpu.matmul %62, %63, %cst_28 {dimension_numbers = #tpu.dot_dimension_numbers<[1], [0], [0], [1], [0, 0, 1, 1], [], []>} : vector<64x32xf32>, vector<32x16xf32>, vector<64x16xf32> -> vector<64x16xf32>
    %65 = vector.broadcast %6 : vector<1x16xf32> to vector<64x16xf32>
    %66 = arith.addf %64, %65 : vector<64x16xf32>
    %c0_29 = arith.constant 0 : index
    %c0_30 = arith.constant 0 : index
    %67 = vector.load %arg7[%c0_29, %c0_30] : memref<64x16xf32, #tpu.memory_space<vmem>>, vector<64x16xf32>
    tpu.vector_store %arg7[%c0_29, %c0_30], %66 {strides = array<i32>} : memref<64x16xf32, #tpu.memory_space<vmem>>, vector<64x16xf32>,
    return
  }
  func.func @transform_0(%arg0: i32) -> (i32, i32) {
    %c0_i32 = arith.constant 0 : i32
    %c0_i32_0 = arith.constant 0 : i32
    return %arg0, %c0_i32 : i32, i32
  }
  func.func @transform_1(%arg0: i32) -> (i32, i32) {
    %c0_i32 = arith.constant 0 : i32
    %c0_i32_0 = arith.constant 0 : i32
    return %arg0, %c0_i32 : i32, i32
  }
  func.func @transform_2(%arg0: i32) -> (i32, i32) {
    %c0_i32 = arith.constant 0 : i32
    %c0_i32_0 = arith.constant 0 : i32
    return %arg0, %c0_i32 : i32, i32
  }
  func.func @transform_3(%arg0: i32) -> (i32, i32, i32) {
    %c0_i32 = arith.constant 0 : i32
    %c0_i32_0 = arith.constant 0 : i32
    %c0_i32_1 = arith.constant 0 : i32
    %c0_i32_2 = arith.constant 0 : i32
    return %c0_i32, %c0_i32_0, %c0_i32_1 : i32, i32, i32
  }
  func.func @transform_4(%arg0: i32) -> (i32, i32) {
    %c0_i32 = arith.constant 0 : i32
    %c0_i32_0 = arith.constant 0 : i32
    %c0_i32_1 = arith.constant 0 : i32
    return %c0_i32, %c0_i32_0 : i32, i32
  }
  func.func @transform_5(%arg0: i32) -> (i32, i32) {
    %c0_i32 = arith.constant 0 : i32
    %c0_i32_0 = arith.constant 0 : i32
    %c0_i32_1 = arith.constant 0 : i32
    return %c0_i32, %c0_i32_0 : i32, i32
  }
  func.func @transform_6(%arg0: i32) -> (i32, i32) {
    %c0_i32 = arith.constant 0 : i32
    %c0_i32_0 = arith.constant 0 : i32
    return %arg0, %c0_i32 : i32, i32
  }
}

</mosaic_0001>

<bundles_post_ra>
// kernel: tpu_custom_call.1
= control target key start
LH: loop header
LB: loop body
LE: loop exit
PB: predicated region body
PF: predicated region fallthrough
CT: control target
= control target key end

     0   :  { %vm54_vm0 = vcmask 64512   ;;  %vm321_vm1 = vcmask 130048   ;;  %v459_v38 = vlaneseq  ;;  %vm483_vm2 = vcmask 261120   ;;  %s1698_s3 = inlined_call_operand.vmem [shape: f32[3,32,32], index: 3, kind: input, shape index: {}]   ;;  %s1699_s1 = inlined_call_operand.vmem [shape: f32[64,8], index: 1, kind: input, shape index: {}]   ;;  %s1700_s0 = inlined_call_operand.vmem [shape: f32[64,8], index: 0, kind: input, shape index: {}]   ;;  %s1701_s2 = inlined_call_operand.vmem [shape: f32[64,16], index: 2, kind: input, shape index: {}]   ;;  %s1702_s5 = inlined_call_operand.vmem [shape: f32[6,32], index: 5, kind: input, shape index: {}]   ;;  %s1703_s4 = inlined_call_operand.vmem [shape: f32[32,16], index: 4, kind: input, shape index: {}]   ;;  %s1704_s6 = inlined_call_operand.vmem [shape: f32[64,16], index: 6, kind: output, shape index: {}]  }
   0x1   :  { %v25_v0 = vld [vmem:[%s1698_s3 + $0x8] sm:$0xff]  ;;  %v46_v1 = vld [vmem:[%s1699_s1] sm:$0xff]  ;;  %v48_v4 = vld [vmem:[%s1699_s1 + $0x10] sm:$0xff] }
   0x2   :  { %v47_v2 = vld [vmem:[%s1699_s1 + $0x8] sm:$0xff]  ;;  %1168 = vmatprep.subr.mxu0 %v25_v0  ;;  %1170 = vmatprep.mubr.msk.f32.mxu0 %vm54_vm0, %v46_v1  ;;  %v24_v3 = vld [vmem:[%s1698_s3] sm:$0xff]  ;;  %v49_v5 = vld [vmem:[%s1699_s1 + $0x18] sm:$0xff]  ;;  %v1493_v39 = vshrl.u32 %v459_v38, 7 }
   0x3   :  { %1169 = vmatpush3.msra.mxu0 %v25_v0  ;;  %v26_v6 = vld [vmem:[%s1698_s3 + $0x10] sm:$0xff]  ;;  %v27_v7 = vld [vmem:[%s1698_s3 + $0x18] sm:$0xff]  ;;  %v50_v8 = vld [vmem:[%s1699_s1 + $0x20] sm:$0xff] }
   0x4   :  { %1171 = vmatmul.mubr.msk.f32.vlgmr.msra.gmra.mrb[0].mxu0 %vm54_vm0, %v47_v2  ;;  %1182 = vmatprep.subr.mxu0 %v24_v3  ;;  %v1272_v9 = vpack.c.bf16 %v27_v7, %v26_v6  ;;  %v51_v10 = vld [vmem:[%s1699_s1 + $0x28] sm:$0xff]  ;;  %v52_v11 = vld [vmem:[%s1699_s1 + $0x30] sm:$0xff]  ;;  %v1048_v12 = vld [vmem:[%s1698_s3 + $0x20] sm:$0xff]  ;;  %v461_v40 = vsub.s32 0, %v1493_v39  ;;  %v481_v6 = vsub.s32 1, %v1493_v39 }
   0x5   :  { %1183 = vmatpush3.msra.mxu0 %v24_v3  ;;  %1173 = vmatprep.mubr.msk.f32.mxu0 %vm54_vm0, %v48_v4  ;;  %v1049_v13 = vld [vmem:[%s1698_s3 + $0x28] sm:$0xff]  ;;  %v53_v15 = vld [vmem:[%s1699_s1 + $0x38] sm:$0xff]  ;;  %v38_v16 = vld [vmem:[%s1700_s0] sm:$0xff] }
   0x6   :  { %1273 = vmatprep.subr.bf16.mxu0 %v1272_v9  ;;  %v1276_v14 = vpack.c.bf16 %v1049_v13, %v1048_v12  ;;  %v39_v17 = vld [vmem:[%s1700_s0 + $0x8] sm:$0xff]  ;;  %v40_v18 = vld [vmem:[%s1700_s0 + $0x10] sm:$0xff]  ;;  %v41_v19 = vld [vmem:[%s1700_s0 + $0x18] sm:$0xff] }
   0x7   :  { %v42_v20 = vld [vmem:[%s1700_s0 + $0x20] sm:$0xff]  ;;  %v43_v21 = vld [vmem:[%s1700_s0 + $0x28] sm:$0xff]  ;;  %v44_v22 = vld [vmem:[%s1700_s0 + $0x30] sm:$0xff] }
   0x8   :  { %1174 = vmatmul.mubr.msk.f32.gmra.mrb[2].mxu0 %vm54_vm0, %v49_v5  ;;  %1277 = vmatprep.subr.bf16.mxu1 %v1276_v14  ;;  %v45_v23 = vld [vmem:[%s1700_s0 + $0x38] sm:$0xff]  ;;  %v313_v24 = vld [vmem:[%s1701_s2] sm:$0xff]  ;;  %v314_v25 = vld [vmem:[%s1701_s2 + $0x8] sm:$0xff] }
   0x9   :  { %1176 = vmatprep.mubr.msk.f32.mxu0 %vm54_vm0, %v50_v8  ;;  %1279 = vmatpush3.bf16.msra.mxu1 %v1276_v14  ;;  %v315_v26 = vld [vmem:[%s1701_s2 + $0x10] sm:$0xff]  ;;  %v316_v27 = vld [vmem:[%s1701_s2 + $0x18] sm:$0xff]  ;;  %v317_v28 = vld [vmem:[%s1701_s2 + $0x20] sm:$0xff] }
   0xa   :  { %v318_v29 = vld [vmem:[%s1701_s2 + $0x28] sm:$0xff]  ;;  %v319_v30 = vld [vmem:[%s1701_s2 + $0x30] sm:$0xff]  ;;  %v320_v31 = vld [vmem:[%s1701_s2 + $0x38] sm:$0xff] }
   0xb   :  { %v1050_v32 = vld [vmem:[%s1698_s3 + $0x30] sm:$0xff]  ;;  %v1051_v33 = vld [vmem:[%s1698_s3 + $0x38] sm:$0xff]  ;;  %v1052_v35 = vld [vmem:[%s1698_s3 + $0x40] sm:$0xff] }
   0xc   :  { %1177 = vmatmul.mubr.msk.f32.gmra.mrb[4].mxu0 %vm54_vm0, %v51_v10  ;;  %v1280_v34 = vpack.c.bf16 %v1051_v33, %v1050_v32  ;;  %v1053_v36 = vld [vmem:[%s1698_s3 + $0x48] sm:$0xff]  ;;  %v1499_v41 = vld [vmem:[%s1702_s5] sm:$0x3f]  ;;  %v1054_v47 = vld [vmem:[%s1698_s3 + $0x50] sm:$0xff]  ;;  %v623_v32 = vsub.s32 2, %v1493_v39 }
   0xd   :  { %1179 = vmatprep.mubr.msk.f32.mxu0 %vm54_vm0, %v52_v11  ;;  %v1284_v37 = vpack.c.bf16 %v1053_v36, %v1052_v35  ;;  %v462_v42 = vrot.slane %v1499_v41, %v461_v40  ;;  %v1055_v48 = vld [vmem:[%s1698_s3 + $0x58] sm:$0xff]  ;;  %v482_v7 = vrot.slane %v1499_v41, %v481_v6 }
   0xe   :  { %1281 = vmatprep.subr.bf16.mxu1 %v1280_v34  ;;  %v1288_v54 = vpack.c.bf16 %v1055_v48, %v1054_v47  ;;  %v624_v33 = vrot.slane %v1499_v41, %v623_v32 }
   0xf   :  { %1283 = vmatpush3.bf16.msra.mxu1 %v1280_v34 }
  0x10   :  { %1180 = vmatmul.mubr.msk.f32.gmra.mrb[6].mxu0 %vm54_vm0, %v53_v15  ;;  %1285 = vmatprep.subr.bf16.mxu1 %v1284_v37 }
  0x11   :  { %1184 = vmatprep.mubr.msk.f32.mxu0 %vm54_vm0, %v38_v16 }
  0x14   :  { %1185 = vmatmul.mubr.msk.f32.vlgmr.msra.gmra.mrb[0].mxu0 %vm54_vm0, %v39_v17 }
  0x15   :  { %1275 = vmatpush3.bf16.msra.mxu0 %v1272_v9  ;;  %1187 = vmatprep.mubr.msk.f32.mxu0 %vm54_vm0, %v40_v18 }
  0x18   :  { %1188 = vmatmul.mubr.msk.f32.gmra.mrb[2].mxu0 %vm54_vm0, %v41_v19 }
  0x19   :  { %1190 = vmatprep.mubr.msk.f32.mxu0 %vm54_vm0, %v42_v20 }
  0x1c   :  { %1191 = vmatmul.mubr.msk.f32.gmra.mrb[4].mxu0 %vm54_vm0, %v43_v21 }
  0x1d   :  { %1193 = vmatprep.mubr.msk.f32.mxu0 %vm54_vm0, %v44_v22 }
  0x20   :  { %1194 = vmatmul.mubr.msk.f32.gmra.mrb[6].mxu0 %vm54_vm0, %v45_v23 }
  0x21   :  { %1200 = vmatprep.mubr.msk.f32.mxu0 %vm321_vm1, %v313_v24 }
  0x24   :  { %1201 = vmatmul.mubr.msk.f32.vlgmr.msra.gmra.mrb[0].mxu0 %vm321_vm1, %v314_v25 }
  0x25   :  { %1203 = vmatprep.mubr.msk.f32.mxu0 %vm321_vm1, %v315_v26 }
  0x28   :  { %1204 = vmatmul.mubr.msk.f32.gmra.mrb[2].mxu0 %vm321_vm1, %v316_v27 }
  0x29   :  { %1206 = vmatprep.mubr.msk.f32.mxu0 %vm321_vm1, %v317_v28 }
  0x2c   :  { %1207 = vmatmul.mubr.msk.f32.gmra.mrb[4].mxu0 %vm321_vm1, %v318_v29 }
  0x2d   :  { %1209 = vmatprep.mubr.msk.f32.mxu0 %vm321_vm1, %v319_v30 }
  0x30   :  { %1210 = vmatmul.mubr.msk.f32.gmra.mrb[6].mxu0 %vm321_vm1, %v320_v31 }
  0xf7   :  { %v1202_v43 = vpop.f32.mrb[0].mxu0 }
  0xf8   :  { %v1502_v44 = vadd.f32 %v1202_v43, %v462_v42  ;;  %v412_v45 = vpop.f32.mrb[1].mxu0 }
  0xf9   :  { %v1504_v46 = vadd.f32 %v462_v42, %v412_v45 }
  0xfa   :  { %v472_v51 = vmax.f32 %v1502_v44, 0.0 }
  0xfb   :  { %v471_v49 = vmax.f32 %v1504_v46, 0.0  ;;  %v1205_v50 = vpop.f32.mrb[2].mxu0 }
  0xfc   :  { %v1514_v52 = vadd.f32 %v1205_v50, %v462_v42  ;;  %v422_v53 = vpop.f32.mrb[3].mxu0 }
  0xfd   :  { %v1516_v55 = vadd.f32 %v462_v42, %v422_v53  ;;  %1220 = vmatprep.mubr.msk.f32.mxu1 %vm483_vm2, %v471_v49 }
  0xfe   :  { %1221 = vmatmul.mubr.msk.f32.vlgmr.msra.gmra.mrb[0].mxu1 %vm483_vm2, %v472_v51  ;;  %v474_v58 = vmax.f32 %v1514_v52, 0.0 }
  0xff   :  { %v473_v56 = vmax.f32 %v1516_v55, 0.0  ;;  %v1208_v57 = vpop.f32.mrb[4].mxu0  ;;  %1287 = vmatpush3.bf16.msra.mxu1 %v1284_v37 }
 0x100   :  { %v1526_v59 = vadd.f32 %v1208_v57, %v462_v42  ;;  %v432_v60 = vpop.f32.mrb[5].mxu0  ;;  %1289 = vmatprep.subr.bf16.mxu1 %v1288_v54 }
 0x101   :  { %v1528_v61 = vadd.f32 %v462_v42, %v432_v60  ;;  %1223 = vmatprep.mubr.msk.f32.mxu1 %vm483_vm2, %v473_v56 }
 0x102   :  { %1224 = vmatmul.mubr.msk.f32.gmra.mrb[2].mxu1 %vm483_vm2, %v474_v58  ;;  %v476_v0 = vmax.f32 %v1526_v59, 0.0  ;;  %v905_v59 = vsub.s32 5, %v1493_v39 }
 0x103   :  { %v475_v62 = vmax.f32 %v1528_v61, 0.0  ;;  %v1211_v63 = vpop.f32.mrb[6].mxu0  ;;  %1291 = vmatpush3.bf16.msra.mxu1 %v1288_v54 }
 0x104   :  { %v1538_v1 = vadd.f32 %v1211_v63, %v462_v42  ;;  %v442_v2 = vpop.f32.mrb[7].mxu0 }
 0x105   :  { %v1540_v3 = vadd.f32 %v462_v42, %v442_v2  ;;  %1226 = vmatprep.mubr.msk.f32.mxu1 %vm483_vm2, %v475_v62 }
 0x106   :  { %1227 = vmatmul.mubr.msk.f32.gmra.mrb[4].mxu1 %vm483_vm2, %v476_v0  ;;  %v478_v5 = vmax.f32 %v1538_v1, 0.0 }
 0x107   :  { %v477_v4 = vmax.f32 %v1540_v3, 0.0 }
 0x109   :  { %1229 = vmatprep.mubr.msk.f32.mxu1 %vm483_vm2, %v477_v4 }
 0x10a   :  { %1230 = vmatmul.mubr.msk.f32.gmra.mrb[6].mxu1 %vm483_vm2, %v478_v5 }
 0x1d1   :  { %v1222_v8 = vpop.f32.mrb[0].mxu1 }
 0x1d2   :  { %v580_v9 = vadd.f32 %v1222_v8, %v482_v7  ;;  %v574_v10 = vpop.f32.mrb[1].mxu1 }
 0x1d3   :  { %v575_v11 = vadd.f32 %v574_v10, %v482_v7 }
 0x1d4   :  { %v614_v14 = vmax.f32 %v580_v9, 0.0 }
 0x1d5   :  { %v613_v12 = vmax.f32 %v575_v11, 0.0  ;;  %v1225_v13 = vpop.f32.mrb[2].mxu1 }
 0x1d6   :  { %v590_v15 = vadd.f32 %v1225_v13, %v482_v7  ;;  %v584_v16 = vpop.f32.mrb[3].mxu1 }
 0x1d7   :  { %v585_v17 = vadd.f32 %v584_v16, %v482_v7  ;;  %1240 = vmatprep.mubr.msk.f32.mxu1 %vm483_vm2, %v613_v12 }
 0x1d8   :  { %1241 = vmatmul.mubr.msk.f32.vlgmr.msra.gmra.mrb[8].mxu1 %vm483_vm2, %v614_v14  ;;  %v616_v20 = vmax.f32 %v590_v15, 0.0 }
 0x1d9   :  { %v615_v18 = vmax.f32 %v585_v17, 0.0  ;;  %v1228_v19 = vpop.f32.mrb[4].mxu1 }
 0x1da   :  { %v600_v21 = vadd.f32 %v1228_v19, %v482_v7  ;;  %v594_v22 = vpop.f32.mrb[5].mxu1 }
 0x1db   :  { %v595_v23 = vadd.f32 %v594_v22, %v482_v7  ;;  %1243 = vmatprep.mubr.msk.f32.mxu1 %vm483_vm2, %v615_v18 }
 0x1dc   :  { %1244 = vmatmul.mubr.msk.f32.gmra.mrb[10].mxu1 %vm483_vm2, %v616_v20  ;;  %v618_v26 = vmax.f32 %v600_v21, 0.0 }
 0x1dd   :  { %v617_v24 = vmax.f32 %v595_v23, 0.0  ;;  %v1231_v25 = vpop.f32.mrb[6].mxu1 }
 0x1de   :  { %v610_v27 = vadd.f32 %v1231_v25, %v482_v7  ;;  %v604_v28 = vpop.f32.mrb[7].mxu1 }
 0x1df   :  { %v605_v29 = vadd.f32 %v604_v28, %v482_v7  ;;  %1246 = vmatprep.mubr.msk.f32.mxu1 %vm483_vm2, %v617_v24 }
 0x1e0   :  { %1247 = vmatmul.mubr.msk.f32.gmra.mrb[12].mxu1 %vm483_vm2, %v618_v26  ;;  %v620_v31 = vmax.f32 %v610_v27, 0.0 }
 0x1e1   :  { %v619_v30 = vmax.f32 %v605_v29, 0.0 }
 0x1e3   :  { %1249 = vmatprep.mubr.msk.f32.mxu1 %vm483_vm2, %v619_v30 }
 0x1e4   :  { %1250 = vmatmul.mubr.msk.f32.gmra.mrb[14].mxu1 %vm483_vm2, %v620_v31 }
 0x2ab   :  { %v1242_v34 = vpop.f32.mrb[8].mxu1 }
 0x2ac   :  { %v715_v35 = vpop.f32.mrb[9].mxu1  ;;  %v721_v37 = vadd.f32 %v1242_v34, %v624_v33 }
 0x2ad   :  { %v716_v36 = vadd.f32 %v715_v35, %v624_v33 }
 0x2ae   :  { %v757_v50 = vsel %vm483_vm2, %v721_v37, 0.0 }
 0x2af   :  { %v1245_v38 = vpop.f32.mrb[10].mxu1  ;;  %v754_v40 = vsel %vm483_vm2, %v716_v36, 0.0 }
 0x2b0   :  { %v725_v42 = vpop.f32.mrb[11].mxu1  ;;  %755 = vadd.xlane.f32.xlu0 %v754_v40  ;;  %v731_v45 = vadd.f32 %v1245_v38, %v624_v33 }
 0x2b1   :  { %v726_v43 = vadd.f32 %v725_v42, %v624_v33 }
 0x2b2   :  { %v763_v63 = vsel %vm483_vm2, %v731_v45, 0.0 }
 0x2b3   :  { %v1248_v47 = vpop.f32.mrb[12].mxu1  ;;  %v760_v48 = vsel %vm483_vm2, %v726_v43, 0.0 }
 0x2b4   :  { %v735_v53 = vpop.f32.mrb[13].mxu1  ;;  %761 = vadd.xlane.f32.xlu1 %v760_v48  ;;  %758 = vadd.xlane.f32.xlu0 %v757_v50  ;;  %v741_v57 = vadd.f32 %v1248_v47, %v624_v33 }
 0x2b5   :  { %v736_v54 = vadd.f32 %v735_v53, %v624_v33 }
 0x2b6   :  { %v769_v9 = vsel %vm483_vm2, %v741_v57, 0.0 }
 0x2b7   :  { %v1251_v60 = vpop.f32.mrb[14].mxu1  ;;  %v766_v2 = vsel %vm483_vm2, %v736_v54, 0.0 }
 0x2b8   :  { %764 = vadd.xlane.f32.xlu1 %v763_v63  ;;  %767 = vadd.xlane.f32.xlu0 %v766_v2  ;;  %v745_v6 = vpop.f32.mrb[15].mxu1  ;;  %v751_v8 = vadd.f32 %v1251_v60, %v624_v33 }
 0x2b9   :  { %v746_v7 = vadd.f32 %v745_v6, %v624_v33  ;;  %v899_v6 = vld [vmem:[%s1703_s4] sm:$0xff] }
 0x2ba   :  { %v775_v11 = vsel %vm483_vm2, %v751_v8, 0.0 }
 0x2bb   :  { %v772_v10 = vsel %vm483_vm2, %v746_v7, 0.0 }
 0x2bc   :  { %770 = vadd.xlane.f32.xlu1 %v769_v9  ;;  %773 = vadd.xlane.f32.xlu0 %v772_v10  ;;  %v901_v9 = vld [vmem:[%s1703_s4 + $0x10] sm:$0xff]  ;;  %v902_v10 = vld [vmem:[%s1703_s4 + $0x18] sm:$0xff] }
 0x2c0   :  { %776 = vadd.xlane.f32.xlu1 %v775_v11  ;;  %v1296_v11 = vpack.c.bf16 %v902_v10, %v901_v9 }
 0x33d   :  { %v756_v12 = vpop.xlane.xlu0 %755 }
 0x33e   :  { %v779_v13 = vmul.f32 0.03125, %v756_v12 }
 0x340   :  { %v1576_v14 = vsub.f32 %v716_v36, %v779_v13 }
 0x341   :  { %v762_v15 = vpop.xlane.xlu1 %761  ;;  %v759_v16 = vpop.xlane.xlu0 %758 }
 0x342   :  { %v781_v17 = vmul.f32 0.03125, %v762_v15  ;;  %v780_v18 = vmul.f32 0.03125, %v759_v16  ;;  %v795_v19 = vmul.f32 %v1576_v14, %v1576_v14 }
 0x344   :  { %v1580_v20 = vsub.f32 %v726_v43, %v781_v17  ;;  %v1582_v21 = vsub.f32 %v721_v37, %v780_v18  ;;  %v803_v22 = vsel %vm483_vm2, %v795_v19, 0.0 }
 0x345   :  { %v765_v23 = vpop.xlane.xlu1 %764  ;;  %v768_v24 = vpop.xlane.xlu0 %767  ;;  %804 = vadd.xlane.f32.xlu0 %v803_v22 }
 0x346   :  { %v782_v25 = vmul.f32 0.03125, %v765_v23  ;;  %v783_v26 = vmul.f32 0.03125, %v768_v24  ;;  %v796_v27 = vmul.f32 %v1582_v21, %v1582_v21  ;;  %v797_v28 = vmul.f32 %v1580_v20, %v1580_v20 }
 0x348   :  { %v1589_v29 = vsub.f32 %v731_v45, %v782_v25  ;;  %v1591_v30 = vsub.f32 %v736_v54, %v783_v26  ;;  %v806_v31 = vsel %vm483_vm2, %v796_v27, 0.0  ;;  %v809_v32 = vsel %vm483_vm2, %v797_v28, 0.0 }
 0x349   :  { %v771_v33 = vpop.xlane.xlu1 %770  ;;  %807 = vadd.xlane.f32.xlu1 %v806_v31  ;;  %810 = vadd.xlane.f32.xlu0 %v809_v32  ;;  %v774_v34 = vpop.xlane.xlu0 %773  ;;  %v861_v28 = vsub.s32 3, %v1493_v39 }
 0x34a   :  { %v784_v35 = vmul.f32 0.03125, %v771_v33  ;;  %v785_v36 = vmul.f32 0.03125, %v774_v34  ;;  %v798_v37 = vmul.f32 %v1589_v29, %v1589_v29  ;;  %v799_v38 = vmul.f32 %v1591_v30, %v1591_v30 }
 0x34b   :  { %v873_v33 = vsub.s32 4, %v1493_v39 }
 0x34c   :  { %v1599_v40 = vsub.f32 %v741_v57, %v784_v35  ;;  %v1601_v42 = vsub.f32 %v746_v7, %v785_v36  ;;  %v812_v43 = vsel %vm483_vm2, %v798_v37, 0.0  ;;  %v815_v45 = vsel %vm483_vm2, %v799_v38, 0.0  ;;  %v900_v7 = vld [vmem:[%s1703_s4 + $0x8] sm:$0xff] }
 0x34d   :  { %813 = vadd.xlane.f32.xlu1 %v812_v43  ;;  %v777_v47 = vpop.xlane.xlu1 %776  ;;  %816 = vadd.xlane.f32.xlu0 %v815_v45  ;;  %v862_v38 = vrot.slane %v1499_v41, %v861_v28 }
 0x34e   :  { %v786_v48 = vmul.f32 0.03125, %v777_v47  ;;  %v800_v50 = vmul.f32 %v1599_v40, %v1599_v40  ;;  %v801_v53 = vmul.f32 %v1601_v42, %v1601_v42 }
 0x350   :  { %v1609_v54 = vsub.f32 %v751_v8, %v786_v48  ;;  %v818_v57 = vsel %vm483_vm2, %v800_v50, 0.0  ;;  %v821_v60 = vsel %vm483_vm2, %v801_v53, 0.0  ;;  %v1292_v8 = vpack.c.bf16 %v900_v7, %v899_v6 }
 0x351   :  { %819 = vadd.xlane.f32.xlu1 %v818_v57  ;;  %822 = vadd.xlane.f32.xlu0 %v821_v60  ;;  %v874_v50 = vrot.slane %v1499_v41, %v873_v33 }
 0x352   :  { %v802_v63 = vmul.f32 %v1609_v54, %v1609_v54  ;;  %1293 = vmatprep.subr.bf16.mxu1 %v1292_v8 }
 0x353   :  { %1295 = vmatpush3.bf16.msra.mxu1 %v1292_v8 }
 0x354   :  { %v824_v2 = vsel %vm483_vm2, %v802_v63, 0.0  ;;  %1297 = vmatprep.subr.bf16.mxu1 %v1296_v11 }
 0x355   :  { %825 = vadd.xlane.f32.xlu1 %v824_v2 }
 0x357   :  { %1299 = vmatpush3.bf16.msra.mxu1 %v1296_v11 }
 0x3d2   :  { %v805_v12 = vpop.xlane.xlu0 %804 }
 0x3d3   :  { %v827_v13 = vmul.f32 0.03125, %v805_v12 }
 0x3d5   :  { %v835_v15 = vadd.f32 1e-05, %v827_v13 }
 0x3d6   :  { %v808_v16 = vpop.xlane.xlu1 %807  ;;  %v811_v17 = vpop.xlane.xlu0 %810 }
 0x3d7   :  { %1316 = vrsqrt.f32 %v835_v15  ;;  %v828_v18 = vmul.f32 0.03125, %v808_v16  ;;  %v829_v19 = vmul.f32 0.03125, %v811_v17 }
 0x3d9   :  { %v836_v22 = vadd.f32 1e-05, %v828_v18  ;;  %v837_v23 = vadd.f32 1e-05, %v829_v19 }
 0x3da   :  { %v814_v24 = vpop.xlane.xlu1 %813  ;;  %v817_v25 = vpop.xlane.xlu0 %816 }
 0x3db   :  { %1318 = vrsqrt.f32 %v836_v22  ;;  %v830_v26 = vmul.f32 0.03125, %v814_v24  ;;  %v831_v27 = vmul.f32 0.03125, %v817_v25 }
 0x3dc   :  { %1320 = vrsqrt.f32 %v837_v23 }
 0x3dd   :  { %v838_v31 = vadd.f32 1e-05, %v830_v26  ;;  %v839_v32 = vadd.f32 1e-05, %v831_v27 }
 0x3de   :  { %v820_v34 = vpop.xlane.xlu1 %819  ;;  %v823_v35 = vpop.xlane.xlu0 %822 }
 0x3df   :  { %1322 = vrsqrt.f32 %v838_v31  ;;  %v832_v36 = vmul.f32 0.03125, %v820_v34  ;;  %v833_v37 = vmul.f32 0.03125, %v823_v35 }
 0x3e0   :  { %1324 = vrsqrt.f32 %v839_v32 }
 0x3e1   :  { %v1317_v43 = vpop.eup %1316  ;;  %v840_v45 = vadd.f32 1e-05, %v832_v36  ;;  %v841_v47 = vadd.f32 1e-05, %v833_v37 }
 0x3e2   :  { %v851_v48 = vmul.f32 %v1317_v43, %v1576_v14  ;;  %v826_v53 = vpop.xlane.xlu1 %825 }
 0x3e3   :  { %1326 = vrsqrt.f32 %v840_v45  ;;  %v834_v57 = vmul.f32 0.03125, %v826_v53 }
 0x3e4   :  { %1328 = vrsqrt.f32 %v841_v47  ;;  %v863_v60 = vmul.f32 %v862_v38, %v851_v48 }
 0x3e5   :  { %v1319_v63 = vpop.eup %1318  ;;  %v842_v2 = vadd.f32 1e-05, %v834_v57 }
 0x3e6   :  { %v1321_v6 = vpop.eup %1320  ;;  %v852_v7 = vmul.f32 %v1319_v63, %v1582_v21  ;;  %v875_v8 = vadd.f32 %v874_v50, %v863_v60 }
 0x3e7   :  { %v853_v9 = vmul.f32 %v1321_v6, %v1580_v20  ;;  %1330 = vrsqrt.f32 %v842_v2 }
 0x3e8   :  { %v864_v10 = vmul.f32 %v862_v38, %v852_v7  ;;  %v883_v14 = vadd.f32 %v875_v8, %v471_v49 }
 0x3e9   :  { %v1323_v11 = vpop.eup %1322  ;;  %v865_v12 = vmul.f32 %v862_v38, %v853_v9 }
 0x3ea   :  { %v1325_v13 = vpop.eup %1324  ;;  %v876_v15 = vadd.f32 %v874_v50, %v864_v10  ;;  %v854_v16 = vmul.f32 %v1323_v11, %v1589_v29  ;;  %v891_v17 = vmax.f32 %v883_v14, 0.0 }
 0x3eb   :  { %v855_v18 = vmul.f32 %v1325_v13, %v1591_v30  ;;  %v877_v19 = vadd.f32 %v874_v50, %v865_v12 }
 0x3ec   :  { %1260 = vmatprep.mubr.msk.f32.mxu1 %vm483_vm2, %v891_v17  ;;  %v884_v20 = vadd.f32 %v876_v15, %v472_v51  ;;  %v866_v21 = vmul.f32 %v862_v38, %v854_v16 }
 0x3ed   :  { %v1327_v22 = vpop.eup %1326  ;;  %v885_v46 = vadd.f32 %v877_v19, %v473_v56  ;;  %v867_v49 = vmul.f32 %v862_v38, %v855_v18 }
 0x3ee   :  { %v1329_v23 = vpop.eup %1328  ;;  %v856_v24 = vmul.f32 %v1327_v22, %v1599_v40  ;;  %v892_v25 = vmax.f32 %v884_v20, 0.0  ;;  %v878_v29 = vadd.f32 %v874_v50, %v866_v21 }
 0x3ef   :  { %v857_v26 = vmul.f32 %v1329_v23, %v1601_v42  ;;  %v893_v30 = vmax.f32 %v885_v46, 0.0  ;;  %v879_v27 = vadd.f32 %v874_v50, %v867_v49 }
 0x3f0   :  { %1261 = vmatmul.mubr.msk.f32.vlgmr.msra.gmra.mrb[16].mxu1 %vm483_vm2, %v892_v25  ;;  %v886_v44 = vadd.f32 %v878_v29, %v474_v58  ;;  %v868_v51 = vmul.f32 %v862_v38, %v856_v24 }
 0x3f1   :  { %v1331_v28 = vpop.eup %1330  ;;  %1263 = vmatprep.mubr.msk.f32.mxu1 %vm483_vm2, %v893_v30  ;;  %v887_v55 = vadd.f32 %v879_v27, %v475_v62  ;;  %v869_v56 = vmul.f32 %v862_v38, %v857_v26 }
 0x3f2   :  { %v858_v40 = vmul.f32 %v1331_v28, %v1609_v54  ;;  %v894_v31 = vmax.f32 %v886_v44, 0.0  ;;  %v880_v32 = vadd.f32 %v874_v50, %v868_v51 }
 0x3f3   :  { %v895_v42 = vmax.f32 %v887_v55, 0.0  ;;  %v881_v33 = vadd.f32 %v874_v50, %v869_v56 }
 0x3f4   :  { %1264 = vmatmul.mubr.msk.f32.gmra.mrb[18].mxu1 %vm483_vm2, %v894_v31  ;;  %v888_v52 = vadd.f32 %v880_v32, %v476_v0  ;;  %v870_v58 = vmul.f32 %v862_v38, %v858_v40  ;;  %v906_v0 = vrot.slane %v1499_v41, %v905_v59 }
 0x3f5   :  { %1266 = vmatprep.mubr.msk.f32.mxu1 %vm483_vm2, %v895_v42  ;;  %v889_v34 = vadd.f32 %v881_v33, %v477_v4 }
 0x3f6   :  { %v896_v61 = vmax.f32 %v888_v52, 0.0  ;;  %v882_v62 = vadd.f32 %v874_v50, %v870_v58 }
 0x3f7   :  { %v897_v35 = vmax.f32 %v889_v34, 0.0 }
 0x3f8   :  { %1267 = vmatmul.mubr.msk.f32.gmra.mrb[20].mxu1 %vm483_vm2, %v896_v61  ;;  %v890_v54 = vadd.f32 %v882_v62, %v478_v5 }
 0x3f9   :  { %1269 = vmatprep.mubr.msk.f32.mxu1 %vm483_vm2, %v897_v35 }
 0x3fa   :  { %v898_v36 = vmax.f32 %v890_v54, 0.0 }
 0x3fc   :  { %1270 = vmatmul.mubr.msk.f32.gmra.mrb[22].mxu1 %vm483_vm2, %v898_v36 }
 0x4c3   :  { %v1262_v37 = vpop.f32.mrb[16].mxu1 }
 0x4c4   :  { %v1003_v3 = vadd.f32 %v1262_v37, %v906_v0  ;;  %v997_v4 = vpop.f32.mrb[17].mxu1 }
 0x4c5   :  { %v998_v38 = vadd.f32 %v997_v4, %v906_v0 }
 0x4c6   :  { %1037 = vst.msk [vmem:[%s1704_s6 + $0x8] sm:$0xff] %vm321_vm1, %v1003_v3 }
 0x4c7   :  { %1036 = vst.msk [vmem:[%s1704_s6] sm:$0xff] %vm321_vm1, %v998_v38  ;;  %v1265_v1 = vpop.f32.mrb[18].mxu1 }
 0x4c8   :  { %v1013_v5 = vadd.f32 %v1265_v1, %v906_v0  ;;  %v1007_v43 = vpop.f32.mrb[19].mxu1 }
 0x4c9   :  { %v1008_v39 = vadd.f32 %v1007_v43, %v906_v0 }
 0x4ca   :  { %1039 = vst.msk [vmem:[%s1704_s6 + $0x18] sm:$0xff] %vm321_vm1, %v1013_v5 }
 0x4cb   :  { %1038 = vst.msk [vmem:[%s1704_s6 + $0x10] sm:$0xff] %vm321_vm1, %v1008_v39  ;;  %v1268_v41 = vpop.f32.mrb[20].mxu1 }
 0x4cc   :  { %v1023_v45 = vadd.f32 %v1268_v41, %v906_v0  ;;  %v1017_v47 = vpop.f32.mrb[21].mxu1 }
 0x4cd   :  { %v1018_v48 = vadd.f32 %v1017_v47, %v906_v0 }
 0x4ce   :  { %1041 = vst.msk [vmem:[%s1704_s6 + $0x28] sm:$0xff] %vm321_vm1, %v1023_v45 }
 0x4cf   :  { %1040 = vst.msk [vmem:[%s1704_s6 + $0x20] sm:$0xff] %vm321_vm1, %v1018_v48  ;;  %v1271_v50 = vpop.f32.mrb[22].mxu1 }
 0x4d0   :  { %v1033_v53 = vadd.f32 %v1271_v50, %v906_v0  ;;  %v1027_v57 = vpop.f32.mrb[23].mxu1 }
 0x4d1   :  { %v1028_v60 = vadd.f32 %v1027_v57, %v906_v0 }
 0x4d2   :  { %1043 = vst.msk [vmem:[%s1704_s6 + $0x38] sm:$0xff] %vm321_vm1, %v1033_v53 }
 0x4d3   :  { %1042 = vst.msk [vmem:[%s1704_s6 + $0x30] sm:$0xff] %vm321_vm1, %v1028_v60 }

</bundles_post_ra>
